<compile_context>
chip_gen: v5e
topology: v5e:2x2
jax: 0.10.0
libtpu: 0.0.40
codegen_flags: <defaults>
</compile_context>

<pallas_src>
import numpy as np
import jax
import jax.numpy as jnp
from jax.experimental import pallas as pl
from jax.experimental.pallas import tpu as pltpu


GATE_PAD = 128  # gate-logit columns padded to one full 128-lane group


def _round_up(n, m):
    return ((n + m - 1) // m) * m


def _build_path_matrices(depth, out_features):
    """Constant ancestor-path matrices for the soft binary tree.

    M_left[g, l*O + o] = 1 if gate g is an ancestor of leaf l and the path to
    leaf l takes the LEFT branch there (contributes sigmoid(z_g)).
    A = M_left + M_right is the plain ancestor indicator.
    Columns are pre-repeated O times and rows padded to GATE_PAD so the padded
    gate-logit block can be used with no slicing / repeat inside the kernel.
    """
    n_leaf = 2 ** depth
    gate_count = n_leaf - 1
    m_left = np.zeros((gate_count, n_leaf), np.float32)
    m_right = np.zeros((gate_count, n_leaf), np.float32)
    for leaf in range(n_leaf):
        node = n_leaf - 1 + leaf            # breadth-first index of this leaf
        while node > 0:
            parent = (node - 1) // 2
            if node == 2 * parent + 1:      # left child  -> sigmoid(z_parent)
                m_left[parent, leaf] = 1.0
            else:                           # right child -> 1 - sigmoid(z_parent)
                m_right[parent, leaf] = 1.0
            node = parent
    O = out_features
    m_left_rep = np.repeat(m_left, O, axis=1)                  # (G, L*O)
    anc_rep = np.repeat(m_left + m_right, O, axis=1)           # (G, L*O)
    pad = ((0, GATE_PAD - gate_count), (0, 0))
    m_left_pad = np.pad(m_left_rep, pad)                       # (128, L*O)
    anc_pad = np.pad(anc_rep, pad)                             # (128, L*O)
    s_sum = np.tile(np.eye(O, dtype=np.float32), (n_leaf, 1))  # (L*O, O)
    return jnp.asarray(m_left_pad), jnp.asarray(anc_pad), jnp.asarray(s_sum)


def pack_hme_params(gw, gb, pw, pb, depth):
    """One-time (init-time) repack of HME parameters into kernel layouts.

    gw: (F, G)  gb: (G,)  pw: (O, F, L)  pb: (O, L)   (torch module layouts)
    """
    F, G = gw.shape
    O, _, L = pw.shape
    assert L == 2 ** depth and G == L - 1

    # Expert weights packed lane-dense:  W_exp[f, l*O + o] = pw[o, f, l]
    w_exp = jnp.transpose(pw, (1, 2, 0)).reshape(F, L * O)
    b_exp = jnp.transpose(pb, (1, 0)).reshape(1, L * O)

    # Single fused weight matrix: [ gates (zero-padded to 128 cols) | experts ]
    w_gate = jnp.pad(gw, ((0, 0), (0, GATE_PAD - G)))
    w_big = jnp.concatenate([w_gate, w_exp], axis=1).astype(jnp.bfloat16)
    b_gate = jnp.pad(gb.reshape(1, G), ((0, 0), (0, GATE_PAD - G)))
    b_big = jnp.concatenate([b_gate, b_exp], axis=1).astype(jnp.float32)

    m_left, anc, s_sum = _build_path_matrices(depth, O)
    return dict(w_big=w_big, b_big=b_big, m_left=m_left, anc=anc, s_sum=s_sum)


def hme_kernel(x_ref, w_ref, b_ref, ml_ref, anc_ref, ssum_ref, out_ref):
    """x_ref: (TB, F) f32; w_ref: (F, 128+L*O) bf16; b_ref: (1, 128+L*O) f32;
    ml_ref/anc_ref: (128, L*O) f32; ssum_ref: (L*O, O) f32; out_ref: (TB, O)."""
    # One fused, lane-dense matmul -> gate logits + all per-leaf expert outputs.
    x = x_ref[...].astype(jnp.bfloat16)                           # cast for MXU
    big = jnp.dot(x, w_ref[...], preferred_element_type=jnp.float32)
    big = big + b_ref[...]                                        # (TB, 128+L*O)

    z = big[:, :GATE_PAD]   # gate logits (padded cols are exactly 0)  (TB,128)
    y = big[:, GATE_PAD:]   # per-leaf expert outputs incl. bias       (TB,L*O)

    # Soft-tree leaf probabilities, fully vectorized (f32 elementwise, v5e-safe):
    #   log p_leaf = z @ M_left - softplus(z) @ A
    # evaluated directly at (TB, L*O) width (leaf prob repeated O times).
    sp_z = jnp.maximum(z, 0.0) + jnp.log(1.0 + jnp.exp(-jnp.abs(z)))
    logp = (jnp.dot(z, ml_ref[...], preferred_element_type=jnp.float32)
            - jnp.dot(sp_z, anc_ref[...], preferred_element_type=jnp.float32))
    leaf_rep = jnp.exp(logp)                                      # (TB, L*O)

    # Mixture: out[b, o] = sum_l leaf[b, l] * (x @ W_l + b_l)[o]
    # NOTE: out is only O(=16) lanes wide -> masked store; negligible here,
    # pad O to 128 in out_shape if this op is ever scaled up.
    out_ref[...] = jnp.dot(y * leaf_rep, ssum_ref[...],
                           preferred_element_type=jnp.float32)


def hme_forward(x, params, *, batch_tile=256):
    """Forward pass. `params` comes from pack_hme_params (packed once)."""
    w_big, b_big = params["w_big"], params["b_big"]
    ml, anc, ssum = params["m_left"], params["anc"], params["s_sum"]
    F = w_big.shape[0]
    n_cols = w_big.shape[1]
    lo = ml.shape[1]
    O = ssum.shape[1]

    B = x.shape[0]
    x = x.astype(jnp.float32)
    tb = min(_round_up(B, 8), batch_tile)      # batch tile (sublane-aligned)
    b_pad = _round_up(B, tb)
    if b_pad != B:
        x = jnp.pad(x, ((0, b_pad - B), (0, 0)))

    out = pl.pallas_call(
        hme_kernel,
        out_shape=jax.ShapeDtypeStruct((b_pad, O), jnp.float32),
        grid=(b_pad // tb,),
        in_specs=[
            pl.BlockSpec((tb, F), lambda i: (i, 0)),         # x batch tile
            pl.BlockSpec((F, n_cols), lambda i: (0, 0)),     # fused weights
            pl.BlockSpec((1, n_cols), lambda i: (0, 0)),     # fused bias
            pl.BlockSpec((GATE_PAD, lo), lambda i: (0, 0)),  # M_left (padded)
            pl.BlockSpec((GATE_PAD, lo), lambda i: (0, 0)),  # ancestor mask
            pl.BlockSpec((lo, O), lambda i: (0, 0)),         # group-sum matrix
        ],
        out_specs=pl.BlockSpec((tb, O), lambda i: (i, 0)),
        compiler_params=pltpu.CompilerParams(
            dimension_semantics=("parallel",)),              # v7x: both TCs
    )(x, w_big, b_big, ml, anc, ssum)
    return out[:B]


def hme_reference(x, gw, gb, pw, pb, depth):
    """Pure-JAX f32 reference mirroring the torch forward() exactly."""
    n_leaf = 2 ** depth
    gat = jax.nn.sigmoid(x @ gw + gb)                         # (B, G)
    B = x.shape[0]
    dens = [jnp.ones((B,), jnp.float32)]
    it = 1
    for d in range(1, depth + 1):
        for _ in range(2 ** d):
            parent = (it + 1) // 2 - 1
            child_way = (it + 1) % 2
            pg = gat[:, parent] if child_way == 0 else 1.0 - gat[:, parent]
            dens.append(dens[parent] * pg)
            it += 1
    node_densities = jnp.stack(dens, axis=1)                  # (B, 2^(d+1)-1)
    leaf = node_densities[:, -n_leaf:].T                      # (L, B)
    gated_projection = jnp.transpose(jnp.matmul(pw, leaf), (2, 0, 1))  # (B,O,F)
    gated_bias = jnp.transpose(jnp.matmul(pb, leaf), (1, 0))           # (B,O)
    return jnp.matmul(gated_projection, x[:, :, None])[:, :, 0] + gated_bias


# TODO(synk): projection='constant' variant of the module is not implemented
# (only the default projection='linear' forward path).

if __name__ == "__main__":
    B = 8
    in_features = 32
    out_features = 16
    depth = 3
    n_leaf = 2 ** depth                 # 8
    gate_count = n_leaf - 1             # 7

    key = jax.random.PRNGKey(0)
    kx, kgw, kgb, kpw, kpb = jax.random.split(key, 5)

    x = jax.random.normal(kx, (B, in_features), dtype=jnp.float32)

    # Deterministic parameter init (kaiming-like scales; shapes from __init__).
    gw = jax.random.normal(kgw, (in_features, gate_count), dtype=jnp.float32) \
         / jnp.sqrt(jnp.float32(in_features))                  # (F, G)
    gb = 0.1 * jax.random.normal(kgb, (gate_count,), dtype=jnp.float32)
    pw = jax.random.normal(kpw, (out_features, in_features, n_leaf),
                           dtype=jnp.float32) / jnp.sqrt(jnp.float32(in_features))
    pb = 0.1 * jax.random.normal(kpb, (out_features, n_leaf), dtype=jnp.float32)

    params = pack_hme_params(gw, gb, pw, pb, depth)   # one-time packing

    out = jax.block_until_ready(hme_forward(x, params))
    ref = jax.block_until_ready(hme_reference(x, gw, gb, pw, pb, depth))

    # bf16 matmul inputs with f32 accumulation -> slightly looser tolerance.
    np.testing.assert_allclose(np.asarray(out), np.asarray(ref),
                               rtol=2e-2, atol=2e-2)

    print("KERNEL_OK")
</pallas_src>

<mosaic_0001>
module attributes {stable_mosaic.version = 11 : i64} {
  func.func @hme_kernel(%arg0: i32, %arg1: memref<8x32xf32, #tpu.memory_space<vmem>>, %arg2: memref<32x256xbf16, #tpu.memory_space<vmem>>, %arg3: memref<1x256xf32, #tpu.memory_space<vmem>>, %arg4: memref<128x128xf32, #tpu.memory_space<vmem>>, %arg5: memref<128x128xf32, #tpu.memory_space<vmem>>, %arg6: memref<128x16xf32, #tpu.memory_space<vmem>>, %arg7: memref<8x16xf32, #tpu.memory_space<vmem>>) attributes {dimension_semantics = [#tpu.dimension_semantics<parallel>], iteration_bounds = array<i64: 1>, scalar_prefetch = 0 : i64, scratch_operands = 0 : i64, tpu.core_type = #tpu.core_type<tc>, window_params = [{transform_indices = @transform_0, window_bounds = array<i64: 8, 32>}, {pipeline_mode = #tpu.pipeline_mode<synchronous>, transform_indices = @transform_1, window_bounds = array<i64: 32, 256>}, {pipeline_mode = #tpu.pipeline_mode<synchronous>, transform_indices = @transform_2, window_bounds = array<i64: 1, 256>}, {pipeline_mode = #tpu.pipeline_mode<synchronous>, transform_indices = @transform_3, window_bounds = array<i64: 128, 128>}, {pipeline_mode = #tpu.pipeline_mode<synchronous>, transform_indices = @transform_4, window_bounds = array<i64: 128, 128>}, {pipeline_mode = #tpu.pipeline_mode<synchronous>, transform_indices = @transform_5, window_bounds = array<i64: 128, 16>}, {transform_indices = @transform_6, window_bounds = array<i64: 8, 16>}]} {
    %c0 = arith.constant 0 : index
    %c0_0 = arith.constant 0 : index
    %0 = vector.load %arg1[%c0, %c0_0] : memref<8x32xf32, #tpu.memory_space<vmem>>, vector<8x32xf32>
    %1 = arith.truncf %0 : vector<8x32xf32> to vector<8x32xbf16>
    %c0_1 = arith.constant 0 : index
    %c0_2 = arith.constant 0 : index
    %2 = vector.load %arg2[%c0_1, %c0_2] : memref<32x256xbf16, #tpu.memory_space<vmem>>, vector<32x256xbf16>
    %cst = arith.constant dense<0.000000e+00> : vector<8x256xf32>
    %3 = tpu.matmul %1, %2, %cst {dimension_numbers = #tpu.dot_dimension_numbers<[1], [0], [0], [1], [0, 0, 1, 1], [], []>} : vector<8x32xbf16>, vector<32x256xbf16>, vector<8x256xf32> -> vector<8x256xf32>
    %c0_3 = arith.constant 0 : index
    %c0_4 = arith.constant 0 : index
    %4 = vector.load %arg3[%c0_3, %c0_4] : memref<1x256xf32, #tpu.memory_space<vmem>>, vector<1x256xf32>
    %5 = vector.broadcast %4 : vector<1x256xf32> to vector<8x256xf32>
    %6 = arith.addf %3, %5 : vector<8x256xf32>
    %7 = vector.extract_strided_slice %6 {offsets = [0, 0], sizes = [8, 128], strides = [1, 1]} : vector<8x256xf32> to vector<8x128xf32>
    %8 = vector.extract_strided_slice %6 {offsets = [0, 128], sizes = [8, 128], strides = [1, 1]} : vector<8x256xf32> to vector<8x128xf32>
    %cst_5 = arith.constant 0.000000e+00 : f32
    %9 = vector.broadcast %cst_5 : f32 to vector<8x128xf32>
    %10 = arith.maximumf %7, %9 : vector<8x128xf32>
    %11 = math.absf %7 : vector<8x128xf32>
    %cst_6 = arith.constant 0.000000e+00 : f32
    %12 = vector.broadcast %cst_6 : f32 to vector<8x128xf32>
    %13 = arith.subf %12, %11 : vector<8x128xf32>
    %14 = math.exp %13 : vector<8x128xf32>
    %cst_7 = arith.constant 1.000000e+00 : f32
    %15 = vector.broadcast %cst_7 : f32 to vector<8x128xf32>
    %16 = arith.addf %15, %14 : vector<8x128xf32>
    %17 = math.log %16 : vector<8x128xf32>
    %18 = arith.addf %10, %17 : vector<8x128xf32>
    %c0_8 = arith.constant 0 : index
    %c0_9 = arith.constant 0 : index
    %19 = vector.load %arg4[%c0_8, %c0_9] : memref<128x128xf32, #tpu.memory_space<vmem>>, vector<128x128xf32>
    %cst_10 = arith.constant dense<0.000000e+00> : vector<8x128xf32>
    %20 = tpu.matmul %7, %19, %cst_10 {dimension_numbers = #tpu.dot_dimension_numbers<[1], [0], [0], [1], [0, 0, 1, 1], [], []>} : vector<8x128xf32>, vector<128x128xf32>, vector<8x128xf32> -> vector<8x128xf32>
    %c0_11 = arith.constant 0 : index
    %c0_12 = arith.constant 0 : index
    %21 = vector.load %arg5[%c0_11, %c0_12] : memref<128x128xf32, #tpu.memory_space<vmem>>, vector<128x128xf32>
    %cst_13 = arith.constant dense<0.000000e+00> : vector<8x128xf32>
    %22 = tpu.matmul %18, %21, %cst_13 {dimension_numbers = #tpu.dot_dimension_numbers<[1], [0], [0], [1], [0, 0, 1, 1], [], []>} : vector<8x128xf32>, vector<128x128xf32>, vector<8x128xf32> -> vector<8x128xf32>
    %23 = arith.subf %20, %22 : vector<8x128xf32>
    %24 = math.exp %23 : vector<8x128xf32>
    %25 = arith.mulf %8, %24 : vector<8x128xf32>
    %c0_14 = arith.constant 0 : index
    %c0_15 = arith.constant 0 : index
    %26 = vector.load %arg6[%c0_14, %c0_15] : memref<128x16xf32, #tpu.memory_space<vmem>>, vector<128x16xf32>
    %cst_16 = arith.constant dense<0.000000e+00> : vector<8x16xf32>
    %27 = tpu.matmul %25, %26, %cst_16 {dimension_numbers = #tpu.dot_dimension_numbers<[1], [0], [0], [1], [0, 0, 1, 1], [], []>} : vector<8x128xf32>, vector<128x16xf32>, vector<8x16xf32> -> vector<8x16xf32>
    %c0_17 = arith.constant 0 : index
    %c0_18 = arith.constant 0 : index
    %28 = vector.load %arg7[%c0_17, %c0_18] : memref<8x16xf32, #tpu.memory_space<vmem>>, vector<8x16xf32>
    tpu.vector_store %arg7[%c0_17, %c0_18], %27 {strides = array<i32>} : memref<8x16xf32, #tpu.memory_space<vmem>>, vector<8x16xf32>,
    return
  }
  func.func @transform_0(%arg0: i32) -> (i32, i32) {
    %c0_i32 = arith.constant 0 : i32
    %c0_i32_0 = arith.constant 0 : i32
    return %arg0, %c0_i32 : i32, i32
  }
  func.func @transform_1(%arg0: i32) -> (i32, i32) {
    %c0_i32 = arith.constant 0 : i32
    %c0_i32_0 = arith.constant 0 : i32
    %c0_i32_1 = arith.constant 0 : i32
    return %c0_i32, %c0_i32_0 : i32, i32
  }
  func.func @transform_2(%arg0: i32) -> (i32, i32) {
    %c0_i32 = arith.constant 0 : i32
    %c0_i32_0 = arith.constant 0 : i32
    %c0_i32_1 = arith.constant 0 : i32
    return %c0_i32, %c0_i32_0 : i32, i32
  }
  func.func @transform_3(%arg0: i32) -> (i32, i32) {
    %c0_i32 = arith.constant 0 : i32
    %c0_i32_0 = arith.constant 0 : i32
    %c0_i32_1 = arith.constant 0 : i32
    return %c0_i32, %c0_i32_0 : i32, i32
  }
  func.func @transform_4(%arg0: i32) -> (i32, i32) {
    %c0_i32 = arith.constant 0 : i32
    %c0_i32_0 = arith.constant 0 : i32
    %c0_i32_1 = arith.constant 0 : i32
    return %c0_i32, %c0_i32_0 : i32, i32
  }
  func.func @transform_5(%arg0: i32) -> (i32, i32) {
    %c0_i32 = arith.constant 0 : i32
    %c0_i32_0 = arith.constant 0 : i32
    %c0_i32_1 = arith.constant 0 : i32
    return %c0_i32, %c0_i32_0 : i32, i32
  }
  func.func @transform_6(%arg0: i32) -> (i32, i32) {
    %c0_i32 = arith.constant 0 : i32
    %c0_i32_0 = arith.constant 0 : i32
    return %arg0, %c0_i32 : i32, i32
  }
}

</mosaic_0001>

<bundles_post_ra>
// kernel: tpu_custom_call.1
= control target key start
LH: loop header
LB: loop body
LE: loop exit
PB: predicated region body
PF: predicated region fallthrough
CT: control target
= control target key end

     0   :  { %11 = vsyncpa [#allocation3], 0  ;;  %s532_s0 = inlined_call_operand.vmem [shape: f32[8,32], index: 0, kind: input, shape index: {}]   ;;  %s533_s1 = inlined_call_operand.hbm [shape: bf16[32,256], index: 1, kind: input, shape index: {}]   ;;  %s534_s2 = inlined_call_operand.vmem [shape: f32[1,256], index: 2, kind: input, shape index: {}]   ;;  %s535_s3 = inlined_call_operand.vmem [shape: f32[128,128], index: 3, kind: input, shape index: {}]   ;;  %s536_s4 = inlined_call_operand.hbm [shape: f32[128,128], index: 4, kind: input, shape index: {}]   ;;  %s537_s5 = inlined_call_operand.vmem [shape: f32[128,16], index: 5, kind: input, shape index: {}]   ;;  %s538_s6 = inlined_call_operand.hbm [shape: f32[8,16], index: 6, kind: output, shape index: {}]  }
   0x1   :  { %12 = vsyncpa [#allocation6], 0 }
   0x2   :  { %13 = vsyncpa [#allocation4], 0  ;;  %s20_s23 = sshll.u32 %s533_s1, 4  ;;  %s371_s24 = smov [#allocation2]   ;;  %s21_s23 = int_to_ptr.hbm [resolvable:$true] %s20_s23 }
   0x3   :  { %s22_s25 = sshll.u32 %s371_s24, 4  ;;  %s37_s28 = sshll.u32 %s536_s4, 4  ;;  %s23_s25 = int_to_ptr.vmem [resolvable:$true] %s22_s25  ;;  %s38_s28 = int_to_ptr.hbm [resolvable:$true] %s37_s28 }
   0x4   :  { %s372_s29 = smov 128   ;;  %s373_s30 = smov 8  }
   0x5   :  { %28 = dma.hbm_to_vmem [thread:$0]  %s21_s23, 512, %s23_s25, [#allocation3], %s372_s29, %s372_s29, %s373_s30  }
   0x6   :  { %s374_s7 = smov [#allocation5]  }
   0x7   :  { %s39_s8 = sshll.u32 %s374_s7, 4  ;;  %s40_s8 = int_to_ptr.vmem [resolvable:$true] %s39_s8 }
   0x8   :  { %45 = dma.hbm_to_vmem [thread:$0]  %s38_s28, 2048, %s40_s8, [#allocation6], %s372_s29, %s372_s29, %s373_s30  }
   0x9   :  { %365 = dma.done.wait [#allocation3], 512  }
   0xa   :  { %366 = vsyncadd [#allocation3], 4294966784 }
   0xb   :  { %367 = dma.done.wait [#allocation6], 2048  }
   0xc   :  { %368 = vsyncadd [#allocation6], 4294965248  ;;  %v270_v0 = vld [vmem:[#allocation2 + $0x10] sm:$0xf]  ;;  %v281_v1 = vld [vmem:[#allocation2 + $0x14] sm:$0xf0] }
   0xd   :  { %v262_v2 = vld [vmem:[#allocation2] sm:$0xf]  ;;  %v271_v3 = vor.u32 %v281_v1, %v270_v0  ;;  %v279_v4 = vld [vmem:[#allocation2 + $0x4] sm:$0xf0]  ;;  %v143_v5 = vld [vmem:[%s535_s3 + $0x78] sm:$0xff]  ;;  %vm89_vm0 = vcmask 261120  }
   0xe   :  { %144 = vmatpush.msra.mxu2 %v143_v5  ;;  %v142_v6 = vld [vmem:[%s535_s3 + $0x70] sm:$0xff]  ;;  %v263_v7 = vor.u32 %v279_v4, %v262_v2  ;;  %v57_v8 = vld [vmem:[%s532_s0] sm:$0xff]  ;;  %v141_v9 = vld [vmem:[%s535_s3 + $0x68] sm:$0xff]  ;;  %s375_s17 = smov [#allocation7]   ;;  %s249_s20 = sshll.u32 %s538_s6, 4  ;;  %vm240_vm1 = vcmask 130048   ;;  %s250_s20 = int_to_ptr.hbm [resolvable:$true] %s249_s20 }
   0xf   :  { %99 = vmatpush.bf16.msra.mxu1 %v271_v3  ;;  %v140_v10 = vld [vmem:[%s535_s3 + $0x60] sm:$0xff]  ;;  %v432_v11 = vpack.c.bf16 %v57_v8, %v57_v8  ;;  %v179_v12 = vld [vmem:[#allocation5 + $0x78] sm:$0xff]  ;;  %v138_v14 = vld [vmem:[%s535_s3 + $0x50] sm:$0xff]  ;;  %s247_s18 = sshll.u32 %s375_s17, 4  ;;  %s248_s18 = int_to_ptr.vmem [resolvable:$true] %s247_s18 }
  0x10   :  { %145 = vmatpush.msra.mxu2 %v142_v6  ;;  %v139_v13 = vld [vmem:[%s535_s3 + $0x58] sm:$0xff]  ;;  %180 = vmatpush.msra.mxu3 %v179_v12  ;;  %v137_v15 = vld [vmem:[%s535_s3 + $0x48] sm:$0xff]  ;;  %v136_v16 = vld [vmem:[%s535_s3 + $0x40] sm:$0xff] }
  0x11   :  { %v135_v17 = vld [vmem:[%s535_s3 + $0x38] sm:$0xff]  ;;  %v134_v18 = vld [vmem:[%s535_s3 + $0x30] sm:$0xff]  ;;  %v133_v19 = vld [vmem:[%s535_s3 + $0x28] sm:$0xff] }
  0x12   :  { %146 = vmatpush.msra.mxu2 %v141_v9  ;;  %v132_v20 = vld [vmem:[%s535_s3 + $0x20] sm:$0xff]  ;;  %v131_v21 = vld [vmem:[%s535_s3 + $0x18] sm:$0xff]  ;;  %v130_v22 = vld [vmem:[%s535_s3 + $0x10] sm:$0xff] }
  0x13   :  { %100 = vmatpush.bf16.msra.mxu1 %v263_v7  ;;  %v129_v23 = vld [vmem:[%s535_s3 + $0x8] sm:$0xff]  ;;  %v178_v24 = vld [vmem:[#allocation5 + $0x70] sm:$0xff]  ;;  %v128_v25 = vld [vmem:[%s535_s3] sm:$0xff] }
  0x14   :  { %147 = vmatpush.msra.mxu2 %v140_v10  ;;  %181 = vmatpush.msra.mxu3 %v178_v24  ;;  %v177_v26 = vld [vmem:[#allocation5 + $0x68] sm:$0xff]  ;;  %v176_v27 = vld [vmem:[#allocation5 + $0x60] sm:$0xff]  ;;  %v175_v28 = vld [vmem:[#allocation5 + $0x58] sm:$0xff] }
  0x15   :  { %v174_v29 = vld [vmem:[#allocation5 + $0x50] sm:$0xff]  ;;  %v173_v30 = vld [vmem:[#allocation5 + $0x48] sm:$0xff]  ;;  %v172_v31 = vld [vmem:[#allocation5 + $0x40] sm:$0xff] }
  0x16   :  { %276 = vmatmul.msk.bf16.vlgmr.msra.gmra.mxu1 %vm89_vm0, %v432_v11  ;;  %148 = vmatpush.msra.mxu2 %v139_v13  ;;  %v171_v32 = vld [vmem:[#allocation5 + $0x38] sm:$0xff]  ;;  %v280_v33 = vld [vmem:[#allocation2 + $0x14] sm:$0xf]  ;;  %v169_v37 = vld [vmem:[#allocation5 + $0x28] sm:$0xff] }
  0x17   :  { %182 = vmatpush.msra.mxu3 %v177_v26  ;;  %v272_v34 = vld [vmem:[#allocation2 + $0x18] sm:$0xf0]  ;;  %v170_v35 = vld [vmem:[#allocation5 + $0x30] sm:$0xff]  ;;  %v168_v38 = vld [vmem:[#allocation5 + $0x20] sm:$0xff] }
  0x18   :  { %149 = vmatpush.msra.mxu2 %v138_v14  ;;  %v275_v36 = vor.u32 %v280_v33, %v272_v34  ;;  %v167_v39 = vld [vmem:[#allocation5 + $0x18] sm:$0xff]  ;;  %v166_v40 = vld [vmem:[#allocation5 + $0x10] sm:$0xff]  ;;  %v165_v41 = vld [vmem:[#allocation5 + $0x8] sm:$0xff] }
  0x19   :  { %183 = vmatpush.msra.mxu3 %v176_v27  ;;  %v164_v42 = vld [vmem:[#allocation5] sm:$0xff]  ;;  %v264_v46 = vld [vmem:[#allocation2 + $0x8] sm:$0xf0]  ;;  %v219_v60 = vld [vmem:[%s537_s5 + $0x78] sm:$0xff] }
  0x1a   :  { %150 = vmatpush.msra.mxu2 %v137_v15  ;;  %112 = vmatpush.bf16.msrb.mxu1 %v275_v36  ;;  %v475_v43 = vld [vmem:[%s534_s2] sm:$0x3]  ;;  %v278_v45 = vld [vmem:[#allocation2 + $0x4] sm:$0xf]  ;;  %v218_v61 = vld [vmem:[%s537_s5 + $0x70] sm:$0xff] }
  0x1b   :  { %184 = vmatpush.msra.mxu3 %v175_v28  ;;  %v65_v44 = vperm.slane %v475_v43, 0  ;;  %v267_v47 = vor.u32 %v278_v45, %v264_v46  ;;  %220 = vmatpush.msra.mxu0 %v219_v60  ;;  %v217_v62 = vld [vmem:[%s537_s5 + $0x68] sm:$0xff]  ;;  %v216_v63 = vld [vmem:[%s537_s5 + $0x60] sm:$0xff]  ;;  %v215_v0 = vld [vmem:[%s537_s5 + $0x58] sm:$0xff] }
  0x1c   :  { %151 = vmatpush.msra.mxu2 %v136_v16  ;;  %v214_v1 = vld [vmem:[%s537_s5 + $0x50] sm:$0xff]  ;;  %v213_v2 = vld [vmem:[%s537_s5 + $0x48] sm:$0xff]  ;;  %v212_v3 = vld [vmem:[%s537_s5 + $0x40] sm:$0xff] }
  0x1d   :  { %185 = vmatpush.msra.mxu3 %v174_v29  ;;  %221 = vmatpush.msra.mxu0 %v218_v61  ;;  %v211_v4 = vld [vmem:[%s537_s5 + $0x38] sm:$0xff]  ;;  %v210_v5 = vld [vmem:[%s537_s5 + $0x30] sm:$0xff]  ;;  %v209_v7 = vld [vmem:[%s537_s5 + $0x28] sm:$0xff] }
  0x1e   :  { %152 = vmatpush.msra.mxu2 %v135_v17  ;;  %113 = vmatpush.bf16.msrb.mxu1 %v267_v47  ;;  %v208_v8 = vld [vmem:[%s537_s5 + $0x20] sm:$0xff]  ;;  %v207_v9 = vld [vmem:[%s537_s5 + $0x18] sm:$0xff]  ;;  %v206_v10 = vld [vmem:[%s537_s5 + $0x10] sm:$0xff] }
  0x1f   :  { %186 = vmatpush.msra.mxu3 %v173_v30  ;;  %222 = vmatpush.msra.mxu0 %v217_v62  ;;  %v204_v13 = vld [vmem:[%s537_s5] sm:$0xff] }
  0x20   :  { %153 = vmatpush.msra.mxu2 %v134_v18  ;;  %v66_v18 = vperm.slane %v475_v43, 1 }
  0x21   :  { %187 = vmatpush.msra.mxu3 %v172_v31  ;;  %223 = vmatpush.msra.mxu0 %v216_v63 }
  0x22   :  { %154 = vmatpush.msra.mxu2 %v133_v19 }
  0x23   :  { %188 = vmatpush.msra.mxu3 %v171_v32  ;;  %224 = vmatpush.msra.mxu0 %v215_v0 }
  0x24   :  { %155 = vmatpush.msra.mxu2 %v132_v20 }
  0x25   :  { %189 = vmatpush.msra.mxu3 %v170_v35  ;;  %225 = vmatpush.msra.mxu0 %v214_v1 }
  0x26   :  { %156 = vmatpush.msra.mxu2 %v131_v21  ;;  %277 = vmatmul.msk.bf16.vlgmr.msrb.gmra.mxu1 %vm89_vm0, %v432_v11  ;;  %v205_v11 = vld [vmem:[%s537_s5 + $0x8] sm:$0xff] }
  0x27   :  { %190 = vmatpush.msra.mxu3 %v169_v37  ;;  %226 = vmatpush.msra.mxu0 %v213_v2 }
  0x28   :  { %157 = vmatpush.msra.mxu2 %v130_v22 }
  0x29   :  { %191 = vmatpush.msra.mxu3 %v168_v38  ;;  %227 = vmatpush.msra.mxu0 %v212_v3 }
  0x2a   :  { %158 = vmatpush.msra.mxu2 %v129_v23 }
  0x2b   :  { %192 = vmatpush.msra.mxu3 %v167_v39  ;;  %228 = vmatpush.msra.mxu0 %v211_v4 }
  0x2c   :  { %159 = vmatpush.msra.mxu2 %v128_v25 }
  0x2d   :  { %193 = vmatpush.msra.mxu3 %v166_v40  ;;  %229 = vmatpush.msra.mxu0 %v210_v5 }
  0x2f   :  { %194 = vmatpush.msra.mxu3 %v165_v41  ;;  %230 = vmatpush.msra.mxu0 %v209_v7 }
  0x31   :  { %195 = vmatpush.msra.mxu3 %v164_v42  ;;  %231 = vmatpush.msra.mxu0 %v208_v8 }
  0x33   :  { %232 = vmatpush.msra.mxu0 %v207_v9 }
  0x35   :  { %233 = vmatpush.msra.mxu0 %v206_v10 }
  0x37   :  { %234 = vmatpush.msra.mxu0 %v205_v11 }
  0x39   :  { %235 = vmatpush.msra.mxu0 %v204_v13 }
  0x93   :  { %v102_v48 = vpop.f32.mrf.mxu1 }
  0x94   :  { %v103_v49 = vadd.f32 %v102_v48, %v65_v44 }
  0x96   :  { %v120_v50 = vand.u32 2147483647, %v103_v49  ;;  %160 = vmatmul.f32.vlgmr.msra.gmra.mxu2 %v103_v49  ;;  %v119_v57 = vmax.f32 %v103_v49, 0.0 }
  0x98   :  { %v121_v51 = vsub.f32 0.0, %v120_v50 }
  0x9a   :  { %v122_v52 = vmul.f32 1.442695, %v121_v51 }
  0x9b   :  { %v104_v53 = vpop.f32.mrf.mxu1 }
  0x9c   :  { %287 = vpow2.f32 %v122_v52 }
  0xa2   :  { %v288_v54 = vpop.eup %287 }
  0xa3   :  { %v124_v55 = vadd.f32 1.0, %v288_v54  ;;  %v115_v6 = vpop.f32.mrf.mxu1 }
  0xa4   :  { %v116_v19 = vadd.f32 %v115_v6, %v66_v18 }
  0xa5   :  { %289 = vlog2.f32 %v124_v55 }
  0xab   :  { %v290_v56 = vpop.eup %289  ;;  %v117_v12 = vpop.f32.mrf.mxu1 }
  0xac   :  { %v126_v58 = vmul.f32 0.6931472, %v290_v56 }
  0xae   :  { %v127_v59 = vadd.f32 %v126_v58, %v119_v57 }
  0xb0   :  { %196 = vmatmul.f32.vlgmr.msra.gmra.mxu3 %v127_v59 }
 0x119   :  { %v161_v14 = vpop.f32.mrf.mxu2 }
 0x133   :  { %v197_v15 = vpop.f32.mrf.mxu3 }
 0x134   :  { %v200_v16 = vsub.f32 %v161_v14, %v197_v15 }
 0x136   :  { %v201_v17 = vmul.f32 1.442695, %v200_v16 }
 0x138   :  { %291 = vpow2.f32 %v201_v17 }
 0x13e   :  { %v292_v20 = vpop.eup %291 }
 0x13f   :  { %v203_v21 = vmul.f32 %v292_v20, %v116_v19 }
 0x141   :  { %236 = vmatmul.f32.vlgmr.msra.gmra.mxu0 %v203_v21 }
 0x1be   :  { %v237_v22 = vpop.f32.mrf.mxu0 }
 0x1bf   :  { %241 = vst.msk [vmem:[#allocation7] sm:$0xff] %vm240_vm1, %v237_v22 }
 0x1c0   :  { %252 = dma.vmem_to_hbm [thread:$0]  %s248_s18, 128, %s250_s20, [#allocation4]  }
 0x1c1   :  { %369 = dma.done.wait [#allocation4], 128  }
 0x1c2   :  { %370 = vsyncadd [#allocation4], 4294967168 }
 0x1c3   :  { %257 = vsyncpa [#allocation3], 1 }
 0x1c4   :  { %258 = vsyncpa [#allocation6], 1 }
 0x1c5   :  { %259 = vsyncpa [#allocation4], 1 }

</bundles_post_ra>
